<compile_context>
chip_gen: v6e
topology: v6e:2x2x1
jax: 0.10.0
libtpu: 0.0.40
codegen_flags: <defaults>
</compile_context>

<pallas_src>
import functools
import math

import jax
import jax.numpy as jnp
from jax.experimental import pallas as pl
from jax.experimental.pallas import tpu as pltpu

_LANES = 128
_SUBLANES = 8
_MAX_TILE_ROWS = 4096          # (4096, 128) f32 tile = 2 MiB
_V_THRESHOLD = 1.0
_VMEM_LIMIT = 48 * 1024 * 1024  # fits v7x's 64 MiB physical VMEM with headroom


def _cdiv(a, b):
    return -(-a // b)


def _slab_dims(n):
    """Rows of the lane-dense slab and per-grid-step tile rows (equalized tiles)."""
    rows = _cdiv(n, _LANES)
    rows = _cdiv(rows, _SUBLANES) * _SUBLANES          # 8-sublane alignment only
    num_tiles = _cdiv(rows, _MAX_TILE_ROWS)
    tile_rows = _cdiv(_cdiv(rows, num_tiles), _SUBLANES) * _SUBLANES
    rows = num_tiles * tile_rows                       # waste bounded by < 8*num_tiles rows
    return rows, tile_rows


def _scaled_if_kernel(x_ref, v_in_ref, out_ref, v_ref, *, scale, inv_scale, v_threshold):
    """One IF-neuron timestep on a (tile_rows, 128) tile.

    Grid is (row_tiles, T); the time axis is the inner ("arbitrary") axis.
      x_ref:    (1, tile_rows, 128) raw (un-scaled) input for this timestep, caller dtype
      v_in_ref: (tile_rows, 128)    initial membrane potential (f32), read only at t == 0
      out_ref:  (1, tile_rows, 128) spike * scale, output dtype
      v_ref:    (tile_rows, 128)    membrane accumulator; block index constant over the time
                                    axis -> stays in VMEM, written to HBM once per row tile.
                                    Aliased onto v_in_ref's HBM buffer.
    """
    t = pl.program_id(1)

    @pl.when(t == 0)
    def _():
        v_ref[...] = v_in_ref[...]            # load persistent state into the VMEM accumulator

    thr = jnp.float32(v_threshold)
    v = v_ref[...] + x_ref[0].astype(jnp.float32) * jnp.float32(inv_scale)   # x = x / scale
    fired = v >= thr
    v_ref[...] = v - jnp.where(fired, thr, jnp.float32(0.0))                 # soft reset (v_reset=None)
    out_ref[0] = jnp.where(fired, jnp.float32(scale),
                           jnp.float32(0.0)).astype(out_ref.dtype)           # spike * scale


def _run_scaled_if(x3d, v2d, *, scale, tile_rows, out_dtype):
    T, rows, lanes = x3d.shape
    assert lanes == _LANES and rows % tile_rows == 0 and tile_rows % _SUBLANES == 0
    grid = (rows // tile_rows, T)
    xo_spec = pl.BlockSpec((1, tile_rows, _LANES), lambda i, t: (t, i, 0))
    v_spec = pl.BlockSpec((tile_rows, _LANES), lambda i, t: (i, 0))
    kernel = functools.partial(
        _scaled_if_kernel,
        scale=float(scale),
        inv_scale=1.0 / float(scale),
        v_threshold=_V_THRESHOLD,
    )
    return pl.pallas_call(
        kernel,
        out_shape=(
            jax.ShapeDtypeStruct((T, rows, _LANES), out_dtype),  # spike * scale
            jax.ShapeDtypeStruct((rows, _LANES), jnp.float32),   # updated membrane v
        ),
        grid_spec=pltpu.PrefetchScalarGridSpec(
            num_scalar_prefetch=0,
            grid=grid,
            in_specs=[xo_spec, v_spec],
            out_specs=(xo_spec, v_spec),
        ),
        input_output_aliases={1: 1},   # v (input 1) updated in place as v_new (output 1)
        compiler_params=pltpu.CompilerParams(
            dimension_semantics=("parallel", "arbitrary"),   # rows across TCs; time sequential
            vmem_limit_bytes=_VMEM_LIMIT,
        ),
    )(x3d, v2d)


def _steps_impl(xs, v2d, *, scale, out_dtype):
    """xs: (T, *activation_shape). Pad/reshape to a lane-dense slab (fused under jit)."""
    if out_dtype is None:
        out_dtype = xs.dtype
    T = xs.shape[0]
    n = math.prod(xs.shape[1:])
    rows, tile_rows = _slab_dims(n)
    flat = xs.reshape(T, n)
    pad = rows * _LANES - n
    if pad:   # pad == 0 for the common (multiple-of-1024) activation sizes
        flat = jnp.pad(flat, ((0, 0), (0, pad)))
    x3d = flat.reshape(T, rows, _LANES)
    out3d, v_new = _run_scaled_if(x3d, v2d, scale=scale, tile_rows=tile_rows,
                                  out_dtype=out_dtype)
    out = out3d.reshape(T, rows * _LANES)
    if pad:
        out = out[:, :n]
    return out.reshape((T,) + xs.shape[1:]), v_new


_scaled_neuron_steps = jax.jit(_steps_impl, static_argnames=("scale", "out_dtype"),
                               donate_argnames=("v2d",))


@functools.partial(jax.jit, static_argnames=("scale", "out_dtype"),
                   donate_argnames=("v2d",))
def _scaled_neuron_step(x, v2d, *, scale, out_dtype):
    out, v_new = _steps_impl(x[None], v2d, scale=scale, out_dtype=out_dtype)
    return out[0], v_new


class ScaledNeuron:
    """JAX/Pallas port of the PyTorch ScaledNeuron module (stateful across calls)."""

    def __init__(self, scale, out_dtype=None):
        self.scale = float(scale)
        self.out_dtype = out_dtype   # None -> same dtype as x; e.g. jnp.bfloat16 to halve out bytes
        self.t = 0
        self._v = None               # lane-dense (rows, 128) f32 membrane potential
        self._n = None               # element count the state was sized for

    def _ensure_state(self, n):
        if self._v is None:
            rows, _ = _slab_dims(n)
            # t == 0 pre-charge neuron(ones*0.5): starting from v = 0, 0.5 never crosses the
            # 1.0 threshold, so the pre-charge is exactly v = 0.5. Bake it into the init.
            self._v = jnp.full((rows, _LANES), 0.5, jnp.float32)
            self._n = n
        elif n != self._n:
            raise ValueError(
                f"ScaledNeuron state was sized for {self._n} elements but got {n}; "
                "call reset() before changing the activation shape.")

    def __call__(self, x):
        self._ensure_state(x.size)
        out, self._v = _scaled_neuron_step(
            x, self._v, scale=self.scale, out_dtype=self.out_dtype)
        self.t += 1
        return out

    def forward_steps(self, xs):
        """Fused path: xs is (T, *activation_shape) with T consecutive timesteps.

        Runs all T steps in one pallas_call with v held in VMEM across the time axis,
        cutting the per-step HBM traffic of the membrane state to ~0.
        """
        self._ensure_state(math.prod(xs.shape[1:]))
        out, self._v = _scaled_neuron_steps(
            xs, self._v, scale=self.scale, out_dtype=self.out_dtype)
        self.t += xs.shape[0]
        return out

    def reset(self):
        self.t = 0
        self._v = None
        self._n = None


def _reference(xs, scale):
    """Pure-JAX reference with identical op ordering / f32 arithmetic."""
    inv = jnp.float32(1.0 / scale)
    thr = jnp.float32(_V_THRESHOLD)
    v = jnp.full(xs.shape[1:], 0.5, jnp.float32)   # after the t == 0 pre-charge
    outs = []
    for xt in xs:
        v = v + xt.astype(jnp.float32) * inv
        fired = v >= thr
        outs.append(jnp.where(fired, jnp.float32(scale), jnp.float32(0.0)).astype(xs.dtype))
        v = v - jnp.where(fired, thr, jnp.float32(0.0))
    return jnp.stack(outs)


if __name__ == "__main__":
    key = jax.random.PRNGKey(0)
    k0, k1 = jax.random.split(key)
    # NCHW, consistent with the post-conv activations the module is applied to.
    x0 = jax.random.normal(k0, (2, 4, 16, 16), dtype=jnp.float32)
    x1 = jax.random.normal(k1, (2, 4, 16, 16), dtype=jnp.float32)
    scale = 1.5

    # Stateful per-timestep path (matches the PyTorch call pattern).
    neuron = ScaledNeuron(scale)
    out0 = neuron(x0)
    out1 = neuron(x1)                      # exercises the t > 0 path (no recompile)
    jax.block_until_ready((out0, out1))

    # Fused multi-timestep path (v resident in VMEM across the time axis).
    neuron.reset()
    xs = jnp.stack([x0, x1])
    outs = jax.block_until_ready(neuron.forward_steps(xs))

    ref = _reference(xs, scale)

    assert out0.shape == x0.shape and out0.dtype == x0.dtype
    assert jnp.allclose(out0, ref[0], atol=1e-6), "t=0 mismatch vs reference"
    assert jnp.allclose(out1, ref[1], atol=1e-6), "t=1 mismatch vs reference"
    assert outs.shape == xs.shape and outs.dtype == xs.dtype
    assert jnp.allclose(outs, ref, atol=1e-6), "fused multi-step mismatch vs reference"

    print("KERNEL_OK")
</pallas_src>

<mosaic_0001>
module attributes {stable_mosaic.version = 11 : i64} {
  func.func @_scaled_if_kernel(%arg0: i32, %arg1: i32, %arg2: memref<1x16x128xf32, #tpu.memory_space<vmem>>, %arg3: memref<16x128xf32, #tpu.memory_space<vmem>>, %arg4: memref<1x16x128xf32, #tpu.memory_space<vmem>>, %arg5: memref<16x128xf32, #tpu.memory_space<vmem>>) attributes {dimension_semantics = [#tpu.dimension_semantics<parallel>, #tpu.dimension_semantics<arbitrary>], iteration_bounds = array<i64: 1, 1>, scalar_prefetch = 0 : i64, scratch_operands = 0 : i64, tpu.core_type = #tpu.core_type<tc>, window_params = [{transform_indices = @transform_0, window_bounds = array<i64: 1, 16, 128>}, {transform_indices = @transform_1, window_bounds = array<i64: 16, 128>}, {transform_indices = @transform_2, window_bounds = array<i64: 1, 16, 128>}, {transform_indices = @transform_3, window_bounds = array<i64: 16, 128>}]} {
    %c0_i32 = arith.constant 0 : i32
    %0 = arith.cmpi eq, %arg1, %c0_i32 : i32
    %1 = arith.extui %0 : i1 to i32
    %c0_i32_0 = arith.constant 0 : i32
    %2 = arith.cmpi ne, %1, %c0_i32_0 : i32
    scf.if %2 {
      %c0_15 = arith.constant 0 : index
      %c0_16 = arith.constant 0 : index
      %22 = vector.load %arg3[%c0_15, %c0_16] : memref<16x128xf32, #tpu.memory_space<vmem>>, vector<16x128xf32>
      %c0_17 = arith.constant 0 : index
      %c0_18 = arith.constant 0 : index
      %23 = vector.load %arg5[%c0_17, %c0_18] : memref<16x128xf32, #tpu.memory_space<vmem>>, vector<16x128xf32>
      tpu.vector_store %arg5[%c0_17, %c0_18], %22 {strides = array<i32>} : memref<16x128xf32, #tpu.memory_space<vmem>>, vector<16x128xf32>,
    } else {
    }
    %c0 = arith.constant 0 : index
    %c0_1 = arith.constant 0 : index
    %3 = vector.load %arg5[%c0, %c0_1] : memref<16x128xf32, #tpu.memory_space<vmem>>, vector<16x128xf32>
    %c0_2 = arith.constant 0 : index
    %c0_3 = arith.constant 0 : index
    %c0_4 = arith.constant 0 : index
    %4 = vector.load %arg2[%c0_2, %c0_3, %c0_4] : memref<1x16x128xf32, #tpu.memory_space<vmem>>, vector<1x16x128xf32>
    %5 = vector.shape_cast %4 : vector<1x16x128xf32> to vector<16x128xf32>
    %cst = arith.constant 0.666666686 : f32
    %6 = vector.broadcast %cst : f32 to vector<16x128xf32>
    %7 = arith.mulf %5, %6 : vector<16x128xf32>
    %8 = arith.addf %3, %7 : vector<16x128xf32>
    %cst_5 = arith.constant 1.000000e+00 : f32
    %9 = vector.broadcast %cst_5 : f32 to vector<16x128xf32>
    %10 = arith.cmpf oge, %8, %9 : vector<16x128xf32>
    %cst_6 = arith.constant 1.000000e+00 : f32
    %cst_7 = arith.constant 0.000000e+00 : f32
    %11 = vector.broadcast %cst_6 : f32 to vector<16x128xf32>
    %12 = vector.broadcast %cst_7 : f32 to vector<16x128xf32>
    %13 = arith.select %10, %11, %12 : vector<16x128xi1>, vector<16x128xf32>
    %14 = arith.subf %8, %13 : vector<16x128xf32>
    %c0_8 = arith.constant 0 : index
    %c0_9 = arith.constant 0 : index
    %15 = vector.load %arg5[%c0_8, %c0_9] : memref<16x128xf32, #tpu.memory_space<vmem>>, vector<16x128xf32>
    tpu.vector_store %arg5[%c0_8, %c0_9], %14 {strides = array<i32>} : memref<16x128xf32, #tpu.memory_space<vmem>>, vector<16x128xf32>,
    %cst_10 = arith.constant 1.500000e+00 : f32
    %cst_11 = arith.constant 0.000000e+00 : f32
    %16 = vector.broadcast %cst_10 : f32 to vector<16x128xf32>
    %17 = vector.broadcast %cst_11 : f32 to vector<16x128xf32>
    %18 = arith.select %10, %16, %17 : vector<16x128xi1>, vector<16x128xf32>
    %c0_12 = arith.constant 0 : index
    %c0_13 = arith.constant 0 : index
    %c0_14 = arith.constant 0 : index
    %19 = vector.load %arg4[%c0_12, %c0_13, %c0_14] : memref<1x16x128xf32, #tpu.memory_space<vmem>>, vector<1x16x128xf32>
    %20 = vector.shape_cast %19 : vector<1x16x128xf32> to vector<16x128xf32>
    %21 = vector.shape_cast %18 : vector<16x128xf32> to vector<1x16x128xf32>
    tpu.vector_store %arg4[%c0_12, %c0_13, %c0_14], %21 {strides = array<i32>} : memref<1x16x128xf32, #tpu.memory_space<vmem>>, vector<1x16x128xf32>,
    return
  }
  func.func @transform_0(%arg0: i32, %arg1: i32) -> (i32, i32, i32) {
    %c0_i32 = arith.constant 0 : i32
    %c0_i32_0 = arith.constant 0 : i32
    return %arg1, %arg0, %c0_i32 : i32, i32, i32
  }
  func.func @transform_1(%arg0: i32, %arg1: i32) -> (i32, i32) {
    %c0_i32 = arith.constant 0 : i32
    %c0_i32_0 = arith.constant 0 : i32
    return %arg0, %c0_i32 : i32, i32
  }
  func.func @transform_2(%arg0: i32, %arg1: i32) -> (i32, i32, i32) {
    %c0_i32 = arith.constant 0 : i32
    %c0_i32_0 = arith.constant 0 : i32
    return %arg1, %arg0, %c0_i32 : i32, i32, i32
  }
  func.func @transform_3(%arg0: i32, %arg1: i32) -> (i32, i32) {
    %c0_i32 = arith.constant 0 : i32
    %c0_i32_0 = arith.constant 0 : i32
    return %arg0, %c0_i32 : i32, i32
  }
}

</mosaic_0001>

<bundles_post_ra>
// kernel: _scaled_neuron_step.1
= control target key start
LH: loop header
LB: loop body
LE: loop exit
PB: predicated region body
PF: predicated region fallthrough
CT: control target
= control target key end

     0   :  { %v50_v8 = vmov 0.0   ;;  %s95_s1 = inlined_call_operand.vmem [shape: f32[16,128], index: 1, kind: input, shape index: {}, may-alias: {1,3}]   ;;  %s96_s0 = inlined_call_operand.vmem [shape: f32[1,16,128], index: 0, kind: input, shape index: {}]   ;;  %s97_s2 = inlined_call_operand.vmem [shape: f32[1,16,128], index: 2, kind: output, shape index: {0}]   ;;  %s98_s3 = inlined_call_operand.vmem [shape: f32[16,128], index: 3, kind: output, shape index: {1}, may-alias: {1,3}]  }
   0x1   :  { %v17_v0 = vld [vmem:[%s95_s1] sm:$0xff]  ;;  %v18_v2 = vld [vmem:[%s95_s1 + $0x8] sm:$0xff] }
   0x2   :  { %v23_v1 = vld [vmem:[%s96_s0] sm:$0xff]  ;;  %v24_v4 = vld [vmem:[%s96_s0 + $0x8] sm:$0xff] }
   0x3   :  { %v25_v3 = vmul.f32 0.6666667, %v23_v1  ;;  %v26_v5 = vmul.f32 0.6666667, %v24_v4 }
   0x5   :  { %v27_v6 = vadd.f32 %v25_v3, %v17_v0  ;;  %v28_v7 = vadd.f32 %v26_v5, %v18_v2 }
   0x7   :  { %vm29_vm0 = vcmp.ge.f32.partialorder %v27_v6, 1.0  ;;  %vm30_vm1 = vcmp.ge.f32.partialorder %v28_v7, 1.0 }
   0x8   :  { %v31_v9 = vsel %vm29_vm0, 1.0, %v50_v8  ;;  %v37_v10 = vsel %vm29_vm0, 1.5, %v50_v8  ;;  %v32_v12 = vsel %vm30_vm1, 1.0, %v50_v8  ;;  %v38_v13 = vsel %vm30_vm1, 1.5, %v50_v8 }
   0x9   :  { %v33_v11 = vsub.f32 %v27_v6, %v31_v9  ;;  %39 = vst [vmem:[%s97_s2] sm:$0xff] %v37_v10  ;;  %v34_v14 = vsub.f32 %v28_v7, %v32_v12  ;;  %40 = vst [vmem:[%s97_s2 + $0x8] sm:$0xff] %v38_v13 }
   0xb   :  { %35 = vst [vmem:[%s98_s3] sm:$0xff] %v33_v11  ;;  %36 = vst [vmem:[%s98_s3 + $0x8] sm:$0xff] %v34_v14 }

</bundles_post_ra>
